<compile_context>
chip_gen: v5e
topology: v5e:2x2
jax: 0.10.0
libtpu: 0.0.40
codegen_flags: <defaults>
</compile_context>

<pallas_src>
import functools
import math

import jax
import jax.numpy as jnp
from jax.experimental import pallas as pl
from jax.experimental.pallas import tpu as pltpu

LANE = 128
SUBLANE_BF16 = 16


def _round_up(x, m):
    return ((x + m - 1) // m) * m


def _cdiv(a, b):
    return (a + b - 1) // b


def _hidden_pad(h):
    # 256-aligned hidden fills the 256-wide MXU on v6e/v7x; 128 is the lane
    # minimum (and native to v5e's 128-wide MXU).
    return _round_up(h, 256) if h > LANE else _round_up(h, LANE)


def _vmem_limit_bytes():
    # Generation-aware VMEM budget: ~48 MiB on v7x (64 MiB physical),
    # ~96 MiB on v5e / v6e (128 MiB physical).  Conservative fallback.
    try:
        cap = int(pltpu.get_tpu_info().vmem_capacity_bytes)
    except Exception:  # non-TPU backend / older jax
        cap = 64 * 1024 * 1024
    return max(16 * 1024 * 1024, min(100 * 1024 * 1024, (cap * 3) // 4))


def _pick_tiles(B, F, H_pad, vmem_limit):
    """Choose (TB, B_pad, nbt, TK, F_pad, nkt) for the discriminator kernel."""
    # ---- batch tile (per side; each grid step also handles the fake tile) ----
    if B <= 128:
        # Single batch tile (lane-dense (1, TB) output block may be < 128 only
        # when it equals the full output row).  Megacore is skipped here; the
        # alternative would force a lane-sparse output layout.
        TB = _round_up(B, SUBLANE_BF16)
    else:
        # >= 2 tiles so v7x megacore can split the "parallel" batch axis; TB is
        # a multiple of 128 (lane-dense output blocks) and as large as is
        # reasonable so w1 is restreamed fewer times in the K-tiled path.
        TB = min(512, max(LANE, ((_round_up(B, LANE) // 2) // LANE) * LANE))
    B_pad = _round_up(B, TB)
    nbt = B_pad // TB

    budget = (vmem_limit * 7) // 10  # headroom for compiler-internal scratch

    def vmem_bytes(tk, with_acc):
        b = 2 * (2 * TB * tk * 2)         # reals + fakes tiles, 2x buffered, bf16
        b += 2 * tk * H_pad * 2           # w1 tile, 2x buffered, bf16
        b += 2 * (2 * H_pad + 1) * 4      # b1, w2^T, b2
        b += 2 * 2 * TB * 4               # two (1, TB) f32 outputs, 2x buffered
        if with_acc:
            b += 2 * TB * H_pad * 4       # two f32 accumulators (scratch)
        return b

    F_aligned = _round_up(F, LANE)
    if vmem_bytes(F_aligned, with_acc=False) <= budget:
        # Whole contraction in one K tile: no scratch, no init/epilogue gating.
        return TB, B_pad, nbt, F_aligned, F_aligned, 1

    fixed = vmem_bytes(0, with_acc=True)
    per_k = 8 * TB + 4 * H_pad            # x tiles + w1 tile bytes per K element
    tk_max = max(LANE, ((budget - fixed) // per_k // LANE) * LANE)
    nkt = _cdiv(F, tk_max)
    TK = _round_up(_cdiv(F, nkt), LANE)   # minimize K padding
    F_pad = TK * nkt
    return TB, B_pad, nbt, TK, F_pad, nkt


# ----------------------------------------------------------------------------
# Kernel 1: fused MLP discriminator -> lane-dense per-sample logit rows
# ----------------------------------------------------------------------------
def _head(acc, b1, w2t, b2):
    """Second discriminator layer on a (TB, H_pad) f32 activation tile.

    Produces a lane-dense (1, TB) logit row: the H->1 contraction is computed
    as a (1,H)@(H,TB) MXU matmul against h.T, so the result is already a row
    (no sublane->lane relayout, no masked (TB,1) column stores).
    """
    h = jnp.maximum(acc + b1, 0.0)                                   # (TB, H)
    return jnp.dot(w2t, h.T, preferred_element_type=jnp.float32) + b2  # (1, TB)


def _disc_logits_single_kernel(r_ref, f_ref, w1_ref, b1_ref, w2t_ref, b2_ref,
                               rl_ref, fl_ref):
    # grid = (nbt,)   -- full contraction in one K tile.
    # r_ref/f_ref: (TB, F_pad) bf16   w1_ref: (F_pad, H_pad) bf16 (fetched once,
    # constant index_map)             b1/w2t: (1, H_pad) f32   b2: (1,1) f32
    # rl_ref/fl_ref: (1, TB) f32 lane-dense logit rows for batch tile i.
    w1 = w1_ref[...]
    b1 = b1_ref[...]
    w2t = w2t_ref[...]
    b2 = b2_ref[...]
    r_acc = jnp.dot(r_ref[...], w1, preferred_element_type=jnp.float32)
    f_acc = jnp.dot(f_ref[...], w1, preferred_element_type=jnp.float32)
    rl_ref[...] = _head(r_acc, b1, w2t, b2)
    fl_ref[...] = _head(f_acc, b1, w2t, b2)


def _disc_logits_ktiled_kernel(r_ref, f_ref, w1_ref, b1_ref, w2t_ref, b2_ref,
                               rl_ref, fl_ref, racc_ref, facc_ref):
    # grid = (nbt, nkt) with K innermost ("arbitrary"); the output index_map
    # ignores k and the accumulators live in scratch — do not reorder the grid.
    k = pl.program_id(1)

    @pl.when(k == 0)
    def _():
        racc_ref[...] = jnp.zeros_like(racc_ref)
        facc_ref[...] = jnp.zeros_like(facc_ref)

    w1 = w1_ref[...]  # one w1 tile load shared by the reals and fakes matmuls
    racc_ref[...] += jnp.dot(r_ref[...], w1, preferred_element_type=jnp.float32)
    facc_ref[...] += jnp.dot(f_ref[...], w1, preferred_element_type=jnp.float32)

    @pl.when(k == pl.num_programs(1) - 1)
    def _():
        b1 = b1_ref[...]
        w2t = w2t_ref[...]
        b2 = b2_ref[...]
        rl_ref[...] = _head(racc_ref[...], b1, w2t, b2)
        fl_ref[...] = _head(facc_ref[...], b1, w2t, b2)


# ----------------------------------------------------------------------------
# Kernel 2: dual contrastive combination of the two logit rows (tiny)
# ----------------------------------------------------------------------------
def _dual_contrastive_kernel(rl_ref, fl_ref, o_ref, *, batch):
    rl = rl_ref[...]   # (1, B_pad) f32, lanes >= batch are padding
    fl = fl_ref[...]   # (1, B_pad) f32
    valid = jax.lax.broadcasted_iota(jnp.int32, rl.shape, 1) < batch

    def half(t1, t2):
        # mean over valid i of  logsumexp({t1_i} U {t2_j : valid j}) - t1_i,
        # in a row-only stable form (per-row max = max(t1_i, max_j t2_j)).
        m2 = jnp.max(jnp.where(valid, t2, -jnp.inf), axis=-1, keepdims=True)
        s2 = jnp.sum(jnp.where(valid, jnp.exp(t2 - m2), 0.0),
                     axis=-1, keepdims=True)                 # in [1, batch]
        m = jnp.maximum(t1, m2)
        lse = m + jnp.log(jnp.exp(t1 - m) + jnp.exp(m2 - m) * s2)
        per_i = jnp.where(valid, lse - t1, 0.0)
        return jnp.sum(per_i, axis=-1, keepdims=True) * (1.0 / batch)  # (1,1)

    o_ref[...] = half(rl, fl) + half(-fl, -rl)


# ----------------------------------------------------------------------------
# Wrapper
# ----------------------------------------------------------------------------
def dual_contrastive_loss(discriminator_params, reals, fakes, scaler=None):
    """Dual contrastive loss of D(reals) vs D(fakes)."""
    del scaler  # TODO(synk): GradScaler only affects the AMP backward path; no forward equivalent.
    w1, b1, w2t, b2 = discriminator_params

    B = fakes.shape[0]
    F = math.prod(fakes.shape[1:])
    H = w1.shape[1]
    H_pad = _hidden_pad(H)

    vmem_limit = _vmem_limit_bytes()
    TB, B_pad, nbt, TK, F_pad, nkt = _pick_tiles(B, F, H_pad, vmem_limit)

    # --- x streams: two separate inputs (no concat), pad only when needed. ---
    # NOTE: inputs are consumed in bf16 by the MXU (matches the reference).
    def prep_x(x):
        x2 = x.reshape(B, F)
        if x2.dtype != jnp.bfloat16:
            x2 = x2.astype(jnp.bfloat16)
        if (B_pad, F_pad) != (B, F):
            x2 = jnp.pad(x2, ((0, B_pad - B), (0, F_pad - F)))
        return x2

    r_x = prep_x(reals)
    f_x = prep_x(fakes)

    # --- params: no copy when already padded/cast (see make_discriminator_params)
    w1_p = w1 if w1.dtype == jnp.bfloat16 else w1.astype(jnp.bfloat16)
    if w1_p.shape != (F_pad, H_pad):
        w1_p = jnp.pad(w1_p, ((0, F_pad - F), (0, H_pad - H)))

    def prep_row(v):
        vp = v if v.dtype == jnp.float32 else v.astype(jnp.float32)
        vp = vp.reshape(1, -1)
        if vp.shape != (1, H_pad):
            vp = jnp.pad(vp, ((0, 0), (0, H_pad - vp.shape[1])))
        return vp

    b1_p = prep_row(b1)
    w2t_p = prep_row(w2t)
    b2_p = jnp.asarray(b2, jnp.float32).reshape(1, 1)

    out_shape = (jax.ShapeDtypeStruct((1, B_pad), jnp.float32),
                 jax.ShapeDtypeStruct((1, B_pad), jnp.float32))

    if nkt == 1:
        grid_spec = pltpu.PrefetchScalarGridSpec(
            num_scalar_prefetch=0,
            grid=(nbt,),
            in_specs=[
                pl.BlockSpec((TB, F_pad), lambda i: (i, 0)),     # reals
                pl.BlockSpec((TB, F_pad), lambda i: (i, 0)),     # fakes
                pl.BlockSpec((F_pad, H_pad), lambda i: (0, 0)),  # w1 (fetched once)
                pl.BlockSpec((1, H_pad), lambda i: (0, 0)),      # b1
                pl.BlockSpec((1, H_pad), lambda i: (0, 0)),      # w2^T
                pl.BlockSpec((1, 1), lambda i: (0, 0)),          # b2
            ],
            out_specs=[
                pl.BlockSpec((1, TB), lambda i: (0, i)),         # real logits row
                pl.BlockSpec((1, TB), lambda i: (0, i)),         # fake logits row
            ],
        )
        kernel = _disc_logits_single_kernel
        semantics = ("parallel",)
    else:
        grid_spec = pltpu.PrefetchScalarGridSpec(
            num_scalar_prefetch=0,
            grid=(nbt, nkt),                                     # K innermost
            in_specs=[
                pl.BlockSpec((TB, TK), lambda i, k: (i, k)),
                pl.BlockSpec((TB, TK), lambda i, k: (i, k)),
                pl.BlockSpec((TK, H_pad), lambda i, k: (k, 0)),
                pl.BlockSpec((1, H_pad), lambda i, k: (0, 0)),
                pl.BlockSpec((1, H_pad), lambda i, k: (0, 0)),
                pl.BlockSpec((1, 1), lambda i, k: (0, 0)),
            ],
            out_specs=[
                pl.BlockSpec((1, TB), lambda i, k: (0, i)),
                pl.BlockSpec((1, TB), lambda i, k: (0, i)),
            ],
            scratch_shapes=[pltpu.VMEM((TB, H_pad), jnp.float32),
                            pltpu.VMEM((TB, H_pad), jnp.float32)],
        )
        kernel = _disc_logits_ktiled_kernel
        semantics = ("parallel", "arbitrary")

    rl_row, fl_row = pl.pallas_call(
        kernel,
        out_shape=out_shape,
        grid_spec=grid_spec,
        compiler_params=pltpu.CompilerParams(
            dimension_semantics=semantics,
            vmem_limit_bytes=vmem_limit,
        ),
    )(r_x, f_x, w1_p, b1_p, w2t_p, b2_p)

    # Lane-dense logit rows go straight into the loss kernel (no glue ops);
    # padded lanes [B:B_pad] are masked inside the kernel.
    loss = pl.pallas_call(
        functools.partial(_dual_contrastive_kernel, batch=B),
        out_shape=jax.ShapeDtypeStruct((1, 1), jnp.float32),
        in_specs=[pl.BlockSpec(memory_space=pltpu.VMEM)] * 2,
        out_specs=pl.BlockSpec(memory_space=pltpu.VMEM),
    )(rl_row, fl_row)

    return loss[0, 0]


def make_discriminator_params(key, in_features, hidden):
    """Synthetic MLP discriminator D(x) = relu(x @ w1 + b1) . w2 + b2.

    Params are created pre-padded / pre-cast for the kernel (hoists the
    per-step pad/cast out of the training hot path): w1 is (F, H_pad) bf16 and
    b1 / w2^T are (1, H_pad) f32, with zeros in the padded hidden columns so
    they contribute nothing to the logit.
    """
    h_pad = _hidden_pad(hidden)
    k1, k2, k3, k4 = jax.random.split(key, 4)
    w1_core = (jax.random.normal(k1, (in_features, hidden), jnp.float32) * 0.02
               ).astype(jnp.bfloat16)
    w1 = jnp.zeros((in_features, h_pad), jnp.bfloat16).at[:, :hidden].set(w1_core)
    b1 = jnp.zeros((1, h_pad), jnp.float32).at[:, :hidden].set(
        jax.random.normal(k2, (1, hidden), jnp.float32) * 0.01)
    w2t = jnp.zeros((1, h_pad), jnp.float32).at[:, :hidden].set(
        jax.random.normal(k3, (1, hidden), jnp.float32) * 0.02)
    b2 = jax.random.normal(k4, (1, 1), jnp.float32) * 0.01
    return (w1, b1, w2t, b2)


if __name__ == "__main__":
    key = jax.random.PRNGKey(0)
    k_fakes, k_reals, k_disc = jax.random.split(key, 3)

    # Small GAN-discriminator-style shapes (NCHW).
    B, C, Hi, Wi = 2, 4, 16, 16
    HIDDEN = 32

    # bf16 inputs (mixed-precision GAN training); kernel consumes them as-is.
    reals = jax.random.normal(k_reals, (B, C, Hi, Wi), jnp.float32).astype(jnp.bfloat16)
    fakes = jax.random.normal(k_fakes, (B, C, Hi, Wi), jnp.float32).astype(jnp.bfloat16)

    disc_params = make_discriminator_params(k_disc, C * Hi * Wi, HIDDEN)

    loss = dual_contrastive_loss(disc_params, reals, fakes, scaler=None)
    loss = jax.block_until_ready(loss)

    # Pure-JAX reference of the same semantics (padded hidden columns are zero).
    w1, b1, w2t, b2 = disc_params
    w1f = w1.astype(jnp.float32)

    def d_ref(x):
        xf = x.reshape(B, -1).astype(jnp.float32)
        h = jnp.maximum(xf @ w1f + b1, 0.0)
        return jnp.sum(h * w2t, axis=-1) + b2[0, 0]

    rl, fl = d_ref(reals), d_ref(fakes)

    def half_ref(t1, t2):
        t = jnp.concatenate(
            [t1[:, None], jnp.broadcast_to(t2[None, :], (t1.shape[0], t2.shape[0]))],
            axis=-1)
        lse = jax.scipy.special.logsumexp(t, axis=-1)
        return jnp.mean(lse - t1)

    ref = half_ref(rl, fl) + half_ref(-fl, -rl)
    assert jnp.allclose(loss, ref, atol=2e-3, rtol=2e-3), (loss, ref)

    print("KERNEL_OK")
</pallas_src>

<mosaic_0001>
module attributes {stable_mosaic.version = 11 : i64} {
  func.func @_disc_logits_single_kernel(%arg0: i32, %arg1: memref<16x1024xbf16, #tpu.memory_space<vmem>>, %arg2: memref<16x1024xbf16, #tpu.memory_space<vmem>>, %arg3: memref<1024x128xbf16, #tpu.memory_space<vmem>>, %arg4: memref<1x128xf32, #tpu.memory_space<vmem>>, %arg5: memref<1x128xf32, #tpu.memory_space<vmem>>, %arg6: memref<1x1xf32, #tpu.memory_space<vmem>>, %arg7: memref<1x16xf32, #tpu.memory_space<vmem>>, %arg8: memref<1x16xf32, #tpu.memory_space<vmem>>) attributes {dimension_semantics = [#tpu.dimension_semantics<parallel>], iteration_bounds = array<i64: 1>, scalar_prefetch = 0 : i64, scratch_operands = 0 : i64, tpu.core_type = #tpu.core_type<tc>, window_params = [{transform_indices = @transform_0, window_bounds = array<i64: 16, 1024>}, {transform_indices = @transform_1, window_bounds = array<i64: 16, 1024>}, {pipeline_mode = #tpu.pipeline_mode<synchronous>, transform_indices = @transform_2, window_bounds = array<i64: 1024, 128>}, {pipeline_mode = #tpu.pipeline_mode<synchronous>, transform_indices = @transform_3, window_bounds = array<i64: 1, 128>}, {pipeline_mode = #tpu.pipeline_mode<synchronous>, transform_indices = @transform_4, window_bounds = array<i64: 1, 128>}, {pipeline_mode = #tpu.pipeline_mode<synchronous>, transform_indices = @transform_5, window_bounds = array<i64: 1, 1>}, {transform_indices = @transform_6, window_bounds = array<i64: 1, 16>}, {transform_indices = @transform_7, window_bounds = array<i64: 1, 16>}]} {
    %c0 = arith.constant 0 : index
    %c0_0 = arith.constant 0 : index
    %0 = vector.load %arg3[%c0, %c0_0] : memref<1024x128xbf16, #tpu.memory_space<vmem>>, vector<1024x128xbf16>
    %c0_1 = arith.constant 0 : index
    %c0_2 = arith.constant 0 : index
    %1 = vector.load %arg4[%c0_1, %c0_2] : memref<1x128xf32, #tpu.memory_space<vmem>>, vector<1x128xf32>
    %c0_3 = arith.constant 0 : index
    %c0_4 = arith.constant 0 : index
    %2 = vector.load %arg5[%c0_3, %c0_4] : memref<1x128xf32, #tpu.memory_space<vmem>>, vector<1x128xf32>
    %c0_5 = arith.constant 0 : index
    %c0_6 = arith.constant 0 : index
    %3 = vector.load %arg6[%c0_5, %c0_6] : memref<1x1xf32, #tpu.memory_space<vmem>>, vector<1x1xf32>
    %c0_7 = arith.constant 0 : index
    %c0_8 = arith.constant 0 : index
    %4 = vector.load %arg1[%c0_7, %c0_8] : memref<16x1024xbf16, #tpu.memory_space<vmem>>, vector<16x1024xbf16>
    %cst = arith.constant dense<0.000000e+00> : vector<16x128xf32>
    %5 = tpu.matmul %4, %0, %cst {dimension_numbers = #tpu.dot_dimension_numbers<[1], [0], [0], [1], [0, 0, 1, 1], [], []>} : vector<16x1024xbf16>, vector<1024x128xbf16>, vector<16x128xf32> -> vector<16x128xf32>
    %c0_9 = arith.constant 0 : index
    %c0_10 = arith.constant 0 : index
    %6 = vector.load %arg2[%c0_9, %c0_10] : memref<16x1024xbf16, #tpu.memory_space<vmem>>, vector<16x1024xbf16>
    %cst_11 = arith.constant dense<0.000000e+00> : vector<16x128xf32>
    %7 = tpu.matmul %6, %0, %cst_11 {dimension_numbers = #tpu.dot_dimension_numbers<[1], [0], [0], [1], [0, 0, 1, 1], [], []>} : vector<16x1024xbf16>, vector<1024x128xbf16>, vector<16x128xf32> -> vector<16x128xf32>
    %8 = vector.broadcast %1 : vector<1x128xf32> to vector<16x128xf32>
    %9 = arith.addf %5, %8 : vector<16x128xf32>
    %cst_12 = arith.constant 0.000000e+00 : f32
    %10 = vector.broadcast %cst_12 : f32 to vector<16x128xf32>
    %11 = arith.maximumf %9, %10 : vector<16x128xf32>
    %12 = tpu.transpose %11, [1, 0] : vector<16x128xf32> -> vector<128x16xf32>
    %cst_13 = arith.constant dense<0.000000e+00> : vector<1x16xf32>
    %13 = tpu.matmul %2, %12, %cst_13 {dimension_numbers = #tpu.dot_dimension_numbers<[1], [0], [0], [1], [0, 0, 1, 1], [], []>} : vector<1x128xf32>, vector<128x16xf32>, vector<1x16xf32> -> vector<1x16xf32>
    %14 = vector.broadcast %3 : vector<1x1xf32> to vector<1x16xf32>
    %15 = arith.addf %13, %14 : vector<1x16xf32>
    %c0_14 = arith.constant 0 : index
    %c0_15 = arith.constant 0 : index
    %16 = vector.load %arg7[%c0_14, %c0_15] : memref<1x16xf32, #tpu.memory_space<vmem>>, vector<1x16xf32>
    tpu.vector_store %arg7[%c0_14, %c0_15], %15 {strides = array<i32>} : memref<1x16xf32, #tpu.memory_space<vmem>>, vector<1x16xf32>,
    %17 = vector.broadcast %1 : vector<1x128xf32> to vector<16x128xf32>
    %18 = arith.addf %7, %17 : vector<16x128xf32>
    %cst_16 = arith.constant 0.000000e+00 : f32
    %19 = vector.broadcast %cst_16 : f32 to vector<16x128xf32>
    %20 = arith.maximumf %18, %19 : vector<16x128xf32>
    %21 = tpu.transpose %20, [1, 0] : vector<16x128xf32> -> vector<128x16xf32>
    %cst_17 = arith.constant dense<0.000000e+00> : vector<1x16xf32>
    %22 = tpu.matmul %2, %21, %cst_17 {dimension_numbers = #tpu.dot_dimension_numbers<[1], [0], [0], [1], [0, 0, 1, 1], [], []>} : vector<1x128xf32>, vector<128x16xf32>, vector<1x16xf32> -> vector<1x16xf32>
    %23 = vector.broadcast %3 : vector<1x1xf32> to vector<1x16xf32>
    %24 = arith.addf %22, %23 : vector<1x16xf32>
    %c0_18 = arith.constant 0 : index
    %c0_19 = arith.constant 0 : index
    %25 = vector.load %arg8[%c0_18, %c0_19] : memref<1x16xf32, #tpu.memory_space<vmem>>, vector<1x16xf32>
    tpu.vector_store %arg8[%c0_18, %c0_19], %24 {strides = array<i32>} : memref<1x16xf32, #tpu.memory_space<vmem>>, vector<1x16xf32>,
    return
  }
  func.func @transform_0(%arg0: i32) -> (i32, i32) {
    %c0_i32 = arith.constant 0 : i32
    %c0_i32_0 = arith.constant 0 : i32
    return %arg0, %c0_i32 : i32, i32
  }
  func.func @transform_1(%arg0: i32) -> (i32, i32) {
    %c0_i32 = arith.constant 0 : i32
    %c0_i32_0 = arith.constant 0 : i32
    return %arg0, %c0_i32 : i32, i32
  }
  func.func @transform_2(%arg0: i32) -> (i32, i32) {
    %c0_i32 = arith.constant 0 : i32
    %c0_i32_0 = arith.constant 0 : i32
    %c0_i32_1 = arith.constant 0 : i32
    return %c0_i32, %c0_i32_0 : i32, i32
  }
  func.func @transform_3(%arg0: i32) -> (i32, i32) {
    %c0_i32 = arith.constant 0 : i32
    %c0_i32_0 = arith.constant 0 : i32
    %c0_i32_1 = arith.constant 0 : i32
    return %c0_i32, %c0_i32_0 : i32, i32
  }
  func.func @transform_4(%arg0: i32) -> (i32, i32) {
    %c0_i32 = arith.constant 0 : i32
    %c0_i32_0 = arith.constant 0 : i32
    %c0_i32_1 = arith.constant 0 : i32
    return %c0_i32, %c0_i32_0 : i32, i32
  }
  func.func @transform_5(%arg0: i32) -> (i32, i32) {
    %c0_i32 = arith.constant 0 : i32
    %c0_i32_0 = arith.constant 0 : i32
    %c0_i32_1 = arith.constant 0 : i32
    return %c0_i32, %c0_i32_0 : i32, i32
  }
  func.func @transform_6(%arg0: i32) -> (i32, i32) {
    %c0_i32 = arith.constant 0 : i32
    %c0_i32_0 = arith.constant 0 : i32
    return %c0_i32, %arg0 : i32, i32
  }
  func.func @transform_7(%arg0: i32) -> (i32, i32) {
    %c0_i32 = arith.constant 0 : i32
    %c0_i32_0 = arith.constant 0 : i32
    return %c0_i32, %arg0 : i32, i32
  }
}

</mosaic_0001>

<bundles_post_ra>
// kernel: tpu_custom_call.1
= control target key start
LH: loop header
LB: loop body
LE: loop exit
PB: predicated region body
PF: predicated region fallthrough
CT: control target
= control target key end

     0   :  { %s1883_s0 = inlined_call_operand.hbm [shape: bf16[16,1024], index: 0, kind: input, shape index: {}]   ;;  %s1884_s1 = inlined_call_operand.hbm [shape: bf16[16,1024], index: 1, kind: input, shape index: {}]   ;;  %s1885_s2 = inlined_call_operand.hbm [shape: bf16[1024,128], index: 2, kind: input, shape index: {}]   ;;  %s1886_s3 = inlined_call_operand.vmem [shape: f32[1,128], index: 3, kind: input, shape index: {}]   ;;  %s1887_s4 = inlined_call_operand.vmem [shape: f32[1,128], index: 4, kind: input, shape index: {}]   ;;  %s1888_s5 = inlined_call_operand.<no memory space> [shape: f32[1,1], index: 5, kind: input, shape index: {}]   ;;  %s1889_s6 = inlined_call_operand.hbm [shape: f32[1,16], index: 6, kind: output, shape index: {0}]   ;;  %s1890_s7 = inlined_call_operand.hbm [shape: f32[1,16], index: 7, kind: output, shape index: {1}]  }
   0x1   :  { %v13_v0 = vstv %s1888_s5 }
   0x2   :  { %14 = vst [vmem:[#allocation2] sm:$0x1] %v13_v0 }
   0x3   :  { %15 = vsyncpa [#allocation4], 0 }
   0x4   :  { %16 = vsyncpa [#allocation7], 0 }
   0x5   :  { %17 = vsyncpa [#allocation5], 0 }
   0x6   :  { %18 = vsyncpa [#allocation11], 0  ;;  %s36_s28 = sshll.u32 %s1884_s1, 4  ;;  %s1541_s29 = smov [#allocation6]   ;;  %s37_s28 = int_to_ptr.hbm [resolvable:$true] %s36_s28 }
   0x7   :  { %s38_s30 = sshll.u32 %s1541_s29, 4  ;;  %s23_s10 = sshll.u32 %s1883_s0, 4  ;;  %s39_s30 = int_to_ptr.vmem [resolvable:$true] %s38_s30  ;;  %s24_s10 = int_to_ptr.hbm [resolvable:$true] %s23_s10 }
   0x8   :  { %s1542_s11 = smov 512   ;;  %s1543_s12 = smov 32  }
   0x9   :  { %44 = dma.hbm_to_vmem [thread:$0]  %s37_s28, 1024, %s39_s30, [#allocation7], %s1542_s11, %s1542_s11, %s1543_s12  }
   0xa   :  { %s1544_s5 = smov [#allocation3]   ;;  %s49_s16 = sshll.u32 %s1885_s2, 4  ;;  %s50_s16 = int_to_ptr.hbm [resolvable:$true] %s49_s16 }
   0xb   :  { %s25_s13 = sshll.u32 %s1544_s5, 4  ;;  %s1545_s1 = smov [#allocation8]   ;;  %s26_s13 = int_to_ptr.vmem [resolvable:$true] %s25_s13 }
   0xc   :  { %31 = dma.hbm_to_vmem [thread:$0]  %s24_s10, 1024, %s26_s13, [#allocation4], %s1542_s11, %s1542_s11, %s1543_s12  }
   0xd   :  { %s51_s17 = sshll.u32 %s1545_s1, 4  ;;  %s1546_s18 = smov 64   ;;  %s52_s17 = int_to_ptr.vmem [resolvable:$true] %s51_s17 }
   0xe   :  { %s1547_s19 = smov 4  }
   0xf   :  { %57 = dma.hbm_to_vmem [thread:$0]  %s50_s16, 8192, %s52_s17, [#allocation7], %s1546_s18, %s1546_s18, %s1547_s19  }
  0x10   :  { %1533 = dma.done.wait [#allocation4], 1024  }
  0x11   :  { %1534 = vsyncadd [#allocation4], 4294966272 }
  0x12   :  { %1535 = dma.done.wait [#allocation7], 9216  }
  0x13   :  { %1536 = vsyncadd [#allocation7], 4294958080  ;;  %v1603_v1 = vld [vmem:[#allocation8 + $0x38] sm:$0xff]  ;;  %v1613_v5 = vld [vmem:[#allocation8 + $0x30] sm:$0xff]  ;;  %vm790_vm0 = vcmask 122880   ;;  %s974_s22 = sshll.u32 %s1889_s6, 4  ;;  %s975_s22 = int_to_ptr.hbm [resolvable:$true] %s974_s22 }
  0x14   :  { %v1605_v2 = vld [vmem:[#allocation8 + $0x78] sm:$0xff]  ;;  %650 = vmatpush.bf16.msra.mxu0 %v1603_v1  ;;  %v1615_v6 = vld [vmem:[#allocation8 + $0x70] sm:$0xff]  ;;  %v1625_v9 = vld [vmem:[#allocation8 + $0x28] sm:$0xff]  ;;  %s1549_s23 = smov [#allocation9]   ;;  %s1550_s25 = smov [#allocation10]  }
  0x15   :  { %v1607_v3 = vld [vmem:[#allocation8 + $0xb8] sm:$0xff]  ;;  %664 = vmatpush.bf16.msra.mxu1 %v1605_v2  ;;  %v1619_v7 = vld [vmem:[#allocation8 + $0xb0] sm:$0xff]  ;;  %v1627_v10 = vld [vmem:[#allocation8 + $0x68] sm:$0xff]  ;;  %s972_s24 = sshll.u32 %s1549_s23, 4  ;;  %s983_s26 = sshll.u32 %s1550_s25, 4  ;;  %s973_s24 = int_to_ptr.vmem [resolvable:$true] %s972_s24  ;;  %s984_s26 = int_to_ptr.vmem [resolvable:$true] %s983_s26 }
  0x16   :  { %v1609_v4 = vld [vmem:[#allocation8 + $0xf8] sm:$0xff]  ;;  %678 = vmatpush.bf16.msra.mxu2 %v1607_v3  ;;  %v1621_v8 = vld [vmem:[#allocation8 + $0xf0] sm:$0xff]  ;;  %v1631_v11 = vld [vmem:[#allocation8 + $0xa8] sm:$0xff]  ;;  %s985_s29 = sshll.u32 %s1890_s7, 4  ;;  %s986_s29 = int_to_ptr.hbm [resolvable:$true] %s985_s29 }
  0x17   :  { %692 = vmatpush.bf16.msra.mxu3 %v1609_v4  ;;  %v1633_v12 = vld [vmem:[#allocation8 + $0xe8] sm:$0xff]  ;;  %v1637_v13 = vld [vmem:[#allocation8 + $0x20] sm:$0xff]  ;;  %v1649_v17 = vld [vmem:[#allocation8 + $0x18] sm:$0xff] }
  0x18   :  { %651 = vmatpush.bf16.msra.mxu0 %v1613_v5  ;;  %1903 = vst [vmem:[#allocation16_spill] sm:$0xff] %v1633_v12  ;;  %v1639_v14 = vld [vmem:[#allocation8 + $0x60] sm:$0xff]  ;;  %v1651_v18 = vld [vmem:[#allocation8 + $0x58] sm:$0xff]  ;;  %v1661_v21 = vld [vmem:[#allocation8 + $0x10] sm:$0xff] }
  0x19   :  { %665 = vmatpush.bf16.msra.mxu1 %v1615_v6  ;;  %v1643_v15 = vld [vmem:[#allocation8 + $0xa0] sm:$0xff]  ;;  %v1655_v19 = vld [vmem:[#allocation8 + $0x98] sm:$0xff]  ;;  %v1663_v22 = vld [vmem:[#allocation8 + $0x50] sm:$0xff] }
  0x1a   :  { %679 = vmatpush.bf16.msra.mxu2 %v1619_v7  ;;  %v1645_v16 = vld [vmem:[#allocation8 + $0xe0] sm:$0xff]  ;;  %v1657_v20 = vld [vmem:[#allocation8 + $0xd8] sm:$0xff]  ;;  %v1667_v23 = vld [vmem:[#allocation8 + $0x90] sm:$0xff] }
  0x1b   :  { %693 = vmatpush.bf16.msra.mxu3 %v1621_v8  ;;  %1904 = vst [vmem:[#allocation17_spill] sm:$0xff] %v1645_v16  ;;  %v1669_v24 = vld [vmem:[#allocation8 + $0xd0] sm:$0xff]  ;;  %v1673_v25 = vld [vmem:[#allocation8 + $0x8] sm:$0xff]  ;;  %v1683_v29 = vld [vmem:[#allocation8] sm:$0xff] }
  0x1c   :  { %652 = vmatpush.bf16.msra.mxu0 %v1625_v9  ;;  %1905 = vst [vmem:[#allocation18_spill] sm:$0xff] %v1657_v20  ;;  %v1675_v26 = vld [vmem:[#allocation8 + $0x48] sm:$0xff]  ;;  %v1685_v30 = vld [vmem:[#allocation8 + $0x40] sm:$0xff]  ;;  %v1693_v33 = vld [vmem:[#allocation8 + $0x138] sm:$0xff] }
  0x1d   :  { %666 = vmatpush.bf16.msra.mxu1 %v1627_v10  ;;  %1906 = vst [vmem:[#allocation19_spill] sm:$0xff] %v1669_v24  ;;  %v1679_v27 = vld [vmem:[#allocation8 + $0x88] sm:$0xff]  ;;  %v1687_v31 = vld [vmem:[#allocation8 + $0x80] sm:$0xff]  ;;  %v1695_v34 = vld [vmem:[#allocation8 + $0x178] sm:$0xff] }
  0x1e   :  { %680 = vmatpush.bf16.msra.mxu2 %v1631_v11  ;;  %v1681_v28 = vld [vmem:[#allocation8 + $0xc8] sm:$0xff]  ;;  %v1689_v32 = vld [vmem:[#allocation8 + $0xc0] sm:$0xff]  ;;  %v1699_v43 = vld [vmem:[#allocation8 + $0x1b8] sm:$0xff] }
  0x1f   :  { %694 = vmatpush.bf16.msra.mxu3 %v1633_v12  ;;  %1907 = vst [vmem:[#allocation20_spill] sm:$0xff] %v1681_v28  ;;  %v1011_v35 = vld [vmem:[#allocation3 + $0x8] sm:$0xf]  ;;  %v1003_v37 = vld [vmem:[#allocation3] sm:$0xf]  ;;  %v1701_v44 = vld [vmem:[#allocation8 + $0x1f8] sm:$0xff] }
  0x20   :  { %653 = vmatpush.bf16.msra.mxu0 %v1637_v13  ;;  %1908 = vst [vmem:[#allocation21_spill] sm:$0xff] %v1689_v32  ;;  %v1390_v36 = vld [vmem:[#allocation3 + $0x24] sm:$0xf0]  ;;  %v1389_v38 = vld [vmem:[#allocation3 + $0x1c] sm:$0xf0]  ;;  %v1709_v49 = vld [vmem:[#allocation8 + $0x130] sm:$0xff] }
  0x21   :  { %667 = vmatpush.bf16.msra.mxu1 %v1639_v14  ;;  %v1386_v39 = vld [vmem:[#allocation3 + $0xc] sm:$0xf]  ;;  %v1385_v41 = vld [vmem:[#allocation3 + $0x4] sm:$0xf]  ;;  %1909 = vst [vmem:[#allocation22_spill] sm:$0xff] %v1701_v44  ;;  %v1012_v45 = vor.u32 %v1390_v36, %v1011_v35  ;;  %v1004_v46 = vor.u32 %v1389_v38, %v1003_v37  ;;  %v1711_v50 = vld [vmem:[#allocation8 + $0x170] sm:$0xff] }
  0x22   :  { %681 = vmatpush.bf16.msra.mxu2 %v1643_v15  ;;  %v1013_v40 = vld [vmem:[#allocation3 + $0x28] sm:$0xf0]  ;;  %v1005_v42 = vld [vmem:[#allocation3 + $0x20] sm:$0xf0]  ;;  %v1715_v51 = vld [vmem:[#allocation8 + $0x1b0] sm:$0xff] }
  0x23   :  { %695 = vmatpush.bf16.msra.mxu3 %v1645_v16  ;;  %v1016_v47 = vor.u32 %v1386_v39, %v1013_v40  ;;  %v1008_v48 = vor.u32 %v1385_v41, %v1005_v42  ;;  %v1717_v52 = vld [vmem:[#allocation8 + $0x1f0] sm:$0xff]  ;;  %v1721_v53 = vld [vmem:[#allocation8 + $0x128] sm:$0xff]  ;;  %v1733_v57 = vld [vmem:[#allocation8 + $0x120] sm:$0xff] }
  0x24   :  { %654 = vmatpush.bf16.msra.mxu0 %v1649_v17  ;;  %1910 = vst [vmem:[#allocation23_spill] sm:$0xff] %v1717_v52  ;;  %v1723_v54 = vld [vmem:[#allocation8 + $0x168] sm:$0xff]  ;;  %v1735_v58 = vld [vmem:[#allocation8 + $0x160] sm:$0xff]  ;;  %v1745_v61 = vld [vmem:[#allocation8 + $0x118] sm:$0xff] }
  0x25   :  { %668 = vmatpush.bf16.msra.mxu1 %v1651_v18  ;;  %v1727_v55 = vld [vmem:[#allocation8 + $0x1a8] sm:$0xff]  ;;  %v1739_v59 = vld [vmem:[#allocation8 + $0x1a0] sm:$0xff]  ;;  %v1747_v62 = vld [vmem:[#allocation8 + $0x158] sm:$0xff] }
  0x26   :  { %682 = vmatpush.bf16.msra.mxu2 %v1655_v19  ;;  %v1729_v56 = vld [vmem:[#allocation8 + $0x1e8] sm:$0xff]  ;;  %v1741_v60 = vld [vmem:[#allocation8 + $0x1e0] sm:$0xff]  ;;  %v1751_v63 = vld [vmem:[#allocation8 + $0x198] sm:$0xff] }
  0x27   :  { %696 = vmatpush.bf16.msra.mxu3 %v1657_v20  ;;  %1911 = vst [vmem:[#allocation24_spill] sm:$0xff] %v1729_v56  ;;  %v1753_v0 = vld [vmem:[#allocation8 + $0x1d8] sm:$0xff]  ;;  %v1757_v35 = vld [vmem:[#allocation8 + $0x110] sm:$0xff]  ;;  %v1769_v39 = vld [vmem:[#allocation8 + $0x108] sm:$0xff] }
  0x28   :  { %655 = vmatpush.bf16.msra.mxu0 %v1661_v21  ;;  %1912 = vst [vmem:[#allocation25_spill] sm:$0xff] %v1741_v60  ;;  %v1759_v36 = vld [vmem:[#allocation8 + $0x150] sm:$0xff]  ;;  %v1771_v40 = vld [vmem:[#allocation8 + $0x148] sm:$0xff] }
  0x29   :  { %669 = vmatpush.bf16.msra.mxu1 %v1663_v22  ;;  %1913 = vst [vmem:[#allocation26_spill] sm:$0xff] %v1753_v0  ;;  %v1763_v37 = vld [vmem:[#allocation8 + $0x190] sm:$0xff]  ;;  %v1775_v41 = vld [vmem:[#allocation8 + $0x188] sm:$0xff] }
  0x2a   :  { %683 = vmatpush.bf16.msra.mxu2 %v1667_v23  ;;  %v1765_v38 = vld [vmem:[#allocation8 + $0x1d0] sm:$0xff]  ;;  %v1777_v42 = vld [vmem:[#allocation8 + $0x1c8] sm:$0xff] }
  0x2b   :  { %697 = vmatpush.bf16.msra.mxu3 %v1669_v24  ;;  %1914 = vst [vmem:[#allocation27_spill] sm:$0xff] %v1765_v38 }
  0x2c   :  { %656 = vmatpush.bf16.msra.mxu0 %v1673_v25 }
  0x2d   :  { %670 = vmatpush.bf16.msra.mxu1 %v1675_v26 }
  0x2e   :  { %684 = vmatpush.bf16.msra.mxu2 %v1679_v27 }
  0x2f   :  { %698 = vmatpush.bf16.msra.mxu3 %v1681_v28  ;;  %v1029_v28 = vld [vmem:[#allocation3 + $0x38] sm:$0xf0] }
  0x30   :  { %657 = vmatpush.bf16.msra.mxu0 %v1683_v29 }
  0x31   :  { %671 = vmatpush.bf16.msra.mxu1 %v1685_v30 }
  0x32   :  { %685 = vmatpush.bf16.msra.mxu2 %v1687_v31 }
  0x33   :  { %699 = vmatpush.bf16.msra.mxu3 %v1689_v32  ;;  %658 = vmatmul.bf16.vlgmr.msra.gmra.mxu0 %v1004_v46  ;;  %v1781_v46 = vld [vmem:[#allocation8 + $0x140] sm:$0xff]  ;;  %v1388_v32 = vld [vmem:[#allocation3 + $0x1c] sm:$0xf] }
  0x34   :  { %706 = vmatpush.bf16.msrb.mxu0 %v1693_v33  ;;  %672 = vmatmul.bf16.vlgmr.msra.gmra.mxu1 %v1008_v48  ;;  %v1785_v48 = vld [vmem:[#allocation8 + $0x1c0] sm:$0xff]  ;;  %v1032_v12 = vor.u32 %v1388_v32, %v1029_v28 }
  0x35   :  { %720 = vmatpush.bf16.msrb.mxu1 %v1695_v34  ;;  %686 = vmatmul.bf16.vlgmr.msra.gmra.mxu2 %v1012_v45  ;;  %v1779_v45 = vld [vmem:[#allocation8 + $0x100] sm:$0xff] }
  0x36   :  { %734 = vmatpush.bf16.msrb.mxu2 %v1699_v43  ;;  %700 = vmatmul.bf16.vlgmr.msra.gmra.mxu3 %v1016_v47  ;;  %v1783_v47 = vld [vmem:[#allocation8 + $0x180] sm:$0xff] }
  0x37   :  { %748 = vmatpush.bf16.msrb.mxu3 %v1701_v44  ;;  %v1392_v44 = vld [vmem:[#allocation3 + $0x34] sm:$0xf0]  ;;  %v1293_v28 = vld [vmem:[#allocation6 + $0x20] sm:$0xf0] }
  0x38   :  { %707 = vmatpush.bf16.msrb.mxu0 %v1709_v49 }
  0x39   :  { %721 = vmatpush.bf16.msrb.mxu1 %v1711_v50 }
  0x3a   :  { %735 = vmatpush.bf16.msrb.mxu2 %v1715_v51 }
  0x3b   :  { %749 = vmatpush.bf16.msrb.mxu3 %v1717_v52  ;;  %v1027_v52 = vld [vmem:[#allocation3 + $0x18] sm:$0xf] }
  0x3c   :  { %708 = vmatpush.bf16.msrb.mxu0 %v1721_v53  ;;  %v1028_v16 = vor.u32 %v1392_v44, %v1027_v52  ;;  %v1291_v44 = vld [vmem:[#allocation6] sm:$0xf] }
  0x3d   :  { %722 = vmatpush.bf16.msrb.mxu1 %v1723_v54 }
  0x3e   :  { %736 = vmatpush.bf16.msrb.mxu2 %v1727_v55 }
  0x3f   :  { %750 = vmatpush.bf16.msrb.mxu3 %v1729_v56  ;;  %v1387_v56 = vld [vmem:[#allocation3 + $0x14] sm:$0xf] }
  0x40   :  { %709 = vmatpush.bf16.msrb.mxu0 %v1733_v57 }
  0x41   :  { %723 = vmatpush.bf16.msrb.mxu1 %v1735_v58 }
  0x42   :  { %737 = vmatpush.bf16.msrb.mxu2 %v1739_v59 }
  0x43   :  { %751 = vmatpush.bf16.msrb.mxu3 %v1741_v60  ;;  %v1391_v60 = vld [vmem:[#allocation3 + $0x2c] sm:$0xf0] }
  0x44   :  { %710 = vmatpush.bf16.msrb.mxu0 %v1745_v61 }
  0x45   :  { %724 = vmatpush.bf16.msrb.mxu1 %v1747_v62 }
  0x46   :  { %738 = vmatpush.bf16.msrb.mxu2 %v1751_v63 }
  0x47   :  { %752 = vmatpush.bf16.msrb.mxu3 %v1753_v0  ;;  %v1019_v0 = vld [vmem:[#allocation3 + $0x10] sm:$0xf] }
  0x48   :  { %711 = vmatpush.bf16.msrb.mxu0 %v1757_v35  ;;  %v1020_v24 = vor.u32 %v1391_v60, %v1019_v0  ;;  %v1395_v60 = vld [vmem:[#allocation6 + $0x14] sm:$0xf]  ;;  %v1400_v0 = vld [vmem:[#allocation6 + $0x34] sm:$0xf0] }
  0x49   :  { %725 = vmatpush.bf16.msrb.mxu1 %v1759_v36 }
  0x4a   :  { %739 = vmatpush.bf16.msrb.mxu2 %v1763_v37 }
  0x4b   :  { %753 = vmatpush.bf16.msrb.mxu3 %v1765_v38  ;;  %v1021_v38 = vld [vmem:[#allocation3 + $0x30] sm:$0xf0] }
  0x4c   :  { %712 = vmatpush.bf16.msrb.mxu0 %v1769_v39  ;;  %v1024_v20 = vor.u32 %v1387_v56, %v1021_v38  ;;  %v1399_v38 = vld [vmem:[#allocation6 + $0x2c] sm:$0xf0] }
  0x4d   :  { %726 = vmatpush.bf16.msrb.mxu1 %v1771_v40 }
  0x4e   :  { %740 = vmatpush.bf16.msrb.mxu2 %v1775_v41 }
  0x4f   :  { %754 = vmatpush.bf16.msrb.mxu3 %v1777_v42 }
  0x50   :  { %713 = vmatpush.bf16.msrb.mxu0 %v1779_v45 }
  0x51   :  { %727 = vmatpush.bf16.msrb.mxu1 %v1781_v46 }
  0x52   :  { %741 = vmatpush.bf16.msrb.mxu2 %v1783_v47 }
  0x53   :  { %755 = vmatpush.bf16.msrb.mxu3 %v1785_v48  ;;  %714 = vmatmul.bf16.vlgmr.msrb.gmra.mxu0 %v1020_v24 }
  0x54   :  { %728 = vmatmul.bf16.vlgmr.msrb.gmra.mxu1 %v1024_v20 }
  0x55   :  { %742 = vmatmul.bf16.vlgmr.msrb.gmra.mxu2 %v1028_v16  ;;  %832 = vmatpush.bf16.msra.mxu1 %v1603_v1 }
  0x56   :  { %846 = vmatpush.bf16.msra.mxu2 %v1605_v2  ;;  %756 = vmatmul.bf16.vlgmr.msrb.gmra.mxu3 %v1032_v12 }
  0x57   :  { %860 = vmatpush.bf16.msra.mxu3 %v1607_v3 }
  0x59   :  { %833 = vmatpush.bf16.msra.mxu1 %v1613_v5 }
  0x5a   :  { %847 = vmatpush.bf16.msra.mxu2 %v1615_v6  ;;  %v1846_v6 = vld [vmem:[%s1886_s3] ss:$0 sm:$0xff] }
  0x5b   :  { %861 = vmatpush.bf16.msra.mxu3 %v1619_v7 }
  0x5d   :  { %834 = vmatpush.bf16.msra.mxu1 %v1625_v9 }
  0x5e   :  { %848 = vmatpush.bf16.msra.mxu2 %v1627_v10 }
  0x5f   :  { %862 = vmatpush.bf16.msra.mxu3 %v1631_v11 }
  0x61   :  { %835 = vmatpush.bf16.msra.mxu1 %v1637_v13 }
  0x62   :  { %849 = vmatpush.bf16.msra.mxu2 %v1639_v14 }
  0x63   :  { %863 = vmatpush.bf16.msra.mxu3 %v1643_v15 }
  0x65   :  { %836 = vmatpush.bf16.msra.mxu1 %v1649_v17 }
  0x66   :  { %850 = vmatpush.bf16.msra.mxu2 %v1651_v18 }
  0x67   :  { %864 = vmatpush.bf16.msra.mxu3 %v1655_v19 }
  0x69   :  { %837 = vmatpush.bf16.msra.mxu1 %v1661_v21 }
  0x6a   :  { %851 = vmatpush.bf16.msra.mxu2 %v1663_v22 }
  0x6b   :  { %865 = vmatpush.bf16.msra.mxu3 %v1667_v23 }
  0x6d   :  { %838 = vmatpush.bf16.msra.mxu1 %v1673_v25 }
  0x6e   :  { %852 = vmatpush.bf16.msra.mxu2 %v1675_v26 }
  0x6f   :  { %866 = vmatpush.bf16.msra.mxu3 %v1679_v27  ;;  %v1393_v27 = vld [vmem:[#allocation6 + $0x4] sm:$0xf] }
  0x71   :  { %839 = vmatpush.bf16.msra.mxu1 %v1683_v29  ;;  %v1296_v29 = vor.u32 %v1393_v27, %v1293_v28 }
  0x72   :  { %853 = vmatpush.bf16.msra.mxu2 %v1685_v30  ;;  %v1299_v30 = vld [vmem:[#allocation6 + $0x8] sm:$0xf] }
  0x73   :  { %867 = vmatpush.bf16.msra.mxu3 %v1687_v31  ;;  %v1398_v31 = vld [vmem:[#allocation6 + $0x24] sm:$0xf0] }
  0x74   :  { %v1300_v32 = vor.u32 %v1398_v31, %v1299_v30 }
  0x75   :  { %888 = vmatpush.bf16.msrb.mxu1 %v1693_v33  ;;  %854 = vmatmul.bf16.vlgmr.msra.gmra.mxu2 %v1296_v29 }
  0x76   :  { %902 = vmatpush.bf16.msrb.mxu2 %v1695_v34  ;;  %868 = vmatmul.bf16.vlgmr.msra.gmra.mxu3 %v1300_v32 }
  0x77   :  { %916 = vmatpush.bf16.msrb.mxu3 %v1699_v43 }
  0x79   :  { %889 = vmatpush.bf16.msrb.mxu1 %v1709_v49  ;;  %v1397_v49 = vld [vmem:[#allocation6 + $0x1c] sm:$0xf0] }
  0x7a   :  { %903 = vmatpush.bf16.msrb.mxu2 %v1711_v50 }
  0x7b   :  { %917 = vmatpush.bf16.msrb.mxu3 %v1715_v51  ;;  %v1292_v51 = vor.u32 %v1397_v49, %v1291_v44 }
  0x7d   :  { %890 = vmatpush.bf16.msrb.mxu1 %v1721_v53 }
  0x7e   :  { %904 = vmatpush.bf16.msrb.mxu2 %v1723_v54  ;;  %840 = vmatmul.bf16.vlgmr.msra.gmra.mxu1 %v1292_v51 }
  0x7f   :  { %918 = vmatpush.bf16.msrb.mxu3 %v1727_v55 }
  0x81   :  { %891 = vmatpush.bf16.msrb.mxu1 %v1733_v57 }
  0x82   :  { %905 = vmatpush.bf16.msrb.mxu2 %v1735_v58 }
  0x83   :  { %919 = vmatpush.bf16.msrb.mxu3 %v1739_v59  ;;  %v1853_v59 = vld [vmem:[%s1887_s4] sm:$0x1] }
  0x85   :  { %892 = vmatpush.bf16.msrb.mxu1 %v1745_v61  ;;  %v1309_v61 = vld [vmem:[#allocation6 + $0x30] sm:$0xf0] }
  0x86   :  { %906 = vmatpush.bf16.msrb.mxu2 %v1747_v62  ;;  %v1312_v62 = vor.u32 %v1395_v60, %v1309_v61 }
  0x87   :  { %920 = vmatpush.bf16.msrb.mxu3 %v1751_v63  ;;  %v1315_v63 = vld [vmem:[#allocation6 + $0x18] sm:$0xf] }
  0x89   :  { %893 = vmatpush.bf16.msrb.mxu1 %v1757_v35  ;;  %v1316_v35 = vor.u32 %v1400_v0, %v1315_v63 }
  0x8a   :  { %907 = vmatpush.bf16.msrb.mxu2 %v1759_v36  ;;  %v1548_v36 = vmov 0  }
  0x8b   :  { %921 = vmatpush.bf16.msrb.mxu3 %v1763_v37  ;;  %1411 = vset.pattern.permute.xlu0 %v1548_v36  ;;  %v1307_v37 = vld [vmem:[#allocation6 + $0x10] sm:$0xf] }
  0x8d   :  { %894 = vmatpush.bf16.msrb.mxu1 %v1769_v39  ;;  %v1308_v39 = vor.u32 %v1399_v38, %v1307_v37 }
  0x8e   :  { %908 = vmatpush.bf16.msrb.mxu2 %v1771_v40  ;;  %v206_v40 = vld [vmem:[#allocation2] sm:$0x1] }
  0x8f   :  { %922 = vmatpush.bf16.msrb.mxu3 %v1775_v41  ;;  %766 = vperm.xlu0 %1411, %v206_v40   ;;  %v1915_v41 = vld [vmem:[#allocation16_spill] sm:$0xff] }
  0x91   :  { %895 = vmatpush.bf16.msrb.mxu1 %v1779_v45  ;;  %v1917_v45 = vld [vmem:[#allocation18_spill] sm:$0xff] }
  0x92   :  { %909 = vmatpush.bf16.msrb.mxu2 %v1781_v46  ;;  %v1918_v46 = vld [vmem:[#allocation19_spill] sm:$0xff] }
  0x93   :  { %923 = vmatpush.bf16.msrb.mxu3 %v1783_v47  ;;  %v1919_v47 = vld [vmem:[#allocation20_spill] sm:$0xff] }
  0x94   :  { %896 = vmatmul.bf16.vlgmr.msrb.gmra.mxu1 %v1308_v39 }
  0x95   :  { %910 = vmatmul.bf16.vlgmr.msrb.gmra.mxu2 %v1312_v62 }
  0x96   :  { %924 = vmatmul.bf16.vlgmr.msrb.gmra.mxu3 %v1316_v35 }
  0xb0   :  { %v659_v1 = vpop.f32.mrf.mxu0 }
  0xb1   :  { %v673_v2 = vpop.f32.mrf.mxu1  ;;  %v660_v10 = vadd.f32 %v1846_v6, %v659_v1  ;;  %v1394_v1 = vld [vmem:[#allocation6 + $0xc] sm:$0xf] }
  0xb3   :  { %v674_v14 = vadd.f32 %v673_v2, %v660_v10  ;;  %v1301_v2 = vld [vmem:[#allocation6 + $0x28] sm:$0xf0] }
  0xb4   :  { %v1924_v10 = vld [vmem:[#allocation25_spill] sm:$0xff] }
  0xb8   :  { %v687_v3 = vpop.f32.mrf.mxu2  ;;  %v661_v7 = vpop.f32.mrf.mxu0 }
  0xb9   :  { %v701_v5 = vpop.f32.mrf.mxu3  ;;  %v675_v9 = vpop.f32.mrf.mxu1  ;;  %v662_v11 = vadd.f32 %v1846_v6, %v661_v7  ;;  %v688_v18 = vadd.f32 %v687_v3, %v674_v14  ;;  %v1304_v3 = vor.u32 %v1394_v1, %v1301_v2  ;;  %v1922_v7 = vld [vmem:[#allocation23_spill] sm:$0xff] }
  0xba   :  { %v1317_v14 = vld [vmem:[#allocation6 + $0x38] sm:$0xf0] }
  0xbb   :  { %v676_v15 = vadd.f32 %v675_v9, %v662_v11  ;;  %v702_v22 = vadd.f32 %v701_v5, %v688_v18  ;;  %v1920_v5 = vld [vmem:[#allocation21_spill] sm:$0xff]  ;;  %v1923_v9 = vld [vmem:[#allocation24_spill] sm:$0xff]  ;;  %v1925_v11 = vld [vmem:[#allocation26_spill] sm:$0xff] }
  0xc0   :  { %v689_v12 = vpop.f32.mrf.mxu2 }
  0xc1   :  { %v703_v13 = vpop.f32.mrf.mxu3  ;;  %v690_v19 = vadd.f32 %v689_v12, %v676_v15  ;;  %v1926_v12 = vld [vmem:[#allocation27_spill] sm:$0xff] }
  0xc3   :  { %v704_v23 = vadd.f32 %v703_v13, %v690_v19  ;;  %v1396_v13 = vld [vmem:[#allocation6 + $0x1c] sm:$0xf] }
  0xc4   :  { %v1320_v15 = vor.u32 %v1396_v13, %v1317_v14 }
  0xd0   :  { %v715_v16 = vpop.f32.mrf.mxu0 }
  0xd1   :  { %v729_v17 = vpop.f32.mrf.mxu1  ;;  %v716_v25 = vadd.f32 %v715_v16, %v702_v22 }
  0xd3   :  { %v730_v34 = vadd.f32 %v729_v17, %v716_v25 }
  0xd8   :  { %v743_v20 = vpop.f32.mrf.mxu2  ;;  %v717_v24 = vpop.f32.mrf.mxu0 }
  0xd9   :  { %v757_v21 = vpop.f32.mrf.mxu3  ;;  %v718_v26 = vadd.f32 %v717_v24, %v704_v23  ;;  %v731_v33 = vpop.f32.mrf.mxu1  ;;  %v744_v52 = vadd.f32 %v743_v20, %v730_v34 }
  0xdb   :  { %v732_v43 = vadd.f32 %v731_v33, %v718_v26  ;;  %v758_v56 = vadd.f32 %v757_v21, %v744_v52 }
  0xdd   :  { %v762_v58 = vmax.f32 %v758_v56, 0.0 }
  0xe0   :  { %v745_v50 = vpop.f32.mrf.mxu2 }
  0xe1   :  { %v746_v53 = vadd.f32 %v745_v50, %v732_v43  ;;  %v759_v54 = vpop.f32.mrf.mxu3 }
  0xe3   :  { %v760_v55 = vadd.f32 %v759_v54, %v746_v53 }
  0xe5   :  { %v763_v57 = vmax.f32 %v760_v55, 0.0 }
  0xe7   :  { %784 = vmatpush.xpose.msra.mxu0 %v763_v57 }
  0xeb   :  { %785 = vmatpush.xpose.msra.mxu0 %v762_v58 }
  0xee   :  { %786 = vmatmul.f32.vlgmr.msra.gmra.mxu0 %v1853_v59 }
  0xef   :  { %874 = vmatpush.bf16.msrb.mxu0 %v1609_v4  ;;  %v1916_v4 = vld [vmem:[#allocation17_spill] sm:$0xff] }
  0xf3   :  { %875 = vmatpush.bf16.msrb.mxu0 %v1621_v8  ;;  %v1921_v8 = vld [vmem:[#allocation22_spill] sm:$0xff] }
  0xf7   :  { %876 = vmatpush.bf16.msrb.mxu0 %v1915_v41 }
  0xf8   :  { %v855_v21 = vpop.f32.mrf.mxu2 }
  0xf9   :  { %v869_v22 = vpop.f32.mrf.mxu3 }
  0xfb   :  { %877 = vmatpush.bf16.msrb.mxu0 %v1916_v4  ;;  %v841_v20 = vpop.f32.mrf.mxu1 }
  0xfc   :  { %v842_v27 = vadd.f32 %v1846_v6, %v841_v20 }
  0xfe   :  { %v856_v29 = vadd.f32 %v855_v21, %v842_v27 }
  0xff   :  { %878 = vmatpush.bf16.msrb.mxu0 %v1917_v45 }
 0x100   :  { %v857_v24 = vpop.f32.mrf.mxu2  ;;  %v870_v33 = vadd.f32 %v869_v22, %v856_v29 }
 0x101   :  { %v767_v16 = vpop.permute.xlu0 %766  ;;  %v871_v26 = vpop.f32.mrf.mxu3 }
 0x102   :  { %v769_v17 = vperm.slane %v767_v16, 0 }
 0x103   :  { %879 = vmatpush.bf16.msrb.mxu0 %v1918_v46  ;;  %v843_v23 = vpop.f32.mrf.mxu1 }
 0x107   :  { %880 = vmatpush.bf16.msrb.mxu0 %v1919_v47 }
 0x10b   :  { %881 = vmatpush.bf16.msrb.mxu0 %v1920_v5 }
 0x10e   :  { %882 = vmatmul.bf16.vlgmr.msrb.gmra.mxu0 %v1304_v3 }
 0x10f   :  { %930 = vmatpush.bf16.msra.mxu0 %v1921_v8 }
 0x113   :  { %931 = vmatpush.bf16.msra.mxu0 %v1922_v7 }
 0x117   :  { %932 = vmatpush.bf16.msra.mxu0 %v1923_v9 }
 0x118   :  { %v911_v30 = vpop.f32.mrf.mxu2 }
 0x119   :  { %v925_v34 = vpop.f32.mrf.mxu3 }
 0x11b   :  { %933 = vmatpush.bf16.msra.mxu0 %v1924_v10 }
 0x11f   :  { %934 = vmatpush.bf16.msra.mxu0 %v1925_v11 }
 0x120   :  { %v913_v51 = vpop.f32.mrf.mxu2 }
 0x121   :  { %v927_v55 = vpop.f32.mrf.mxu3 }
 0x123   :  { %935 = vmatpush.bf16.msra.mxu0 %v1926_v12 }
 0x127   :  { %936 = vmatpush.bf16.msra.mxu0 %v1777_v42  ;;  %v844_v42 = vadd.f32 %v1846_v6, %v843_v23 }
 0x129   :  { %v858_v28 = vadd.f32 %v857_v24, %v844_v42 }
 0x12b   :  { %937 = vmatpush.bf16.msra.mxu0 %v1785_v48  ;;  %v897_v48 = vpop.f32.mrf.mxu1  ;;  %v872_v31 = vadd.f32 %v871_v26, %v858_v28 }
 0x12e   :  { %938 = vmatmul.bf16.vlgmr.msra.gmra.mxu0 %v1320_v15 }
 0x133   :  { %v899_v44 = vpop.f32.mrf.mxu1 }
 0x16b   :  { %v787_v18 = vpop.f32.mrf.mxu0 }
 0x16c   :  { %v788_v19 = vadd.f32 %v787_v18, %v769_v17 }
 0x16e   :  { %791 = vst.msk [vmem:[#allocation9] sm:$0x1] %vm790_vm0, %v788_v19 }
 0x16f   :  { %977 = dma.vmem_to_hbm [thread:$0]  %s973_s24, 16, %s975_s22, [#allocation5]  }
 0x18b   :  { %v883_v25 = vpop.f32.mrf.mxu0 }
 0x18c   :  { %v884_v49 = vadd.f32 %v883_v25, %v870_v33 }
 0x18e   :  { %v898_v53 = vadd.f32 %v897_v48, %v884_v49 }
 0x190   :  { %v912_v56 = vadd.f32 %v911_v30, %v898_v53 }
 0x192   :  { %v926_v58 = vadd.f32 %v925_v34, %v912_v56 }
 0x193   :  { %v885_v32 = vpop.f32.mrf.mxu0 }
 0x194   :  { %v886_v43 = vadd.f32 %v885_v32, %v872_v31 }
 0x196   :  { %v900_v50 = vadd.f32 %v899_v44, %v886_v43 }
 0x198   :  { %v914_v54 = vadd.f32 %v913_v51, %v900_v50 }
 0x19a   :  { %v928_v57 = vadd.f32 %v927_v55, %v914_v54 }
 0x1ab   :  { %v939_v52 = vpop.f32.mrf.mxu0 }
 0x1ac   :  { %v940_v61 = vadd.f32 %v939_v52, %v926_v58 }
 0x1ae   :  { %v944_v63 = vmax.f32 %v940_v61, 0.0 }
 0x1b3   :  { %v941_v6 = vpop.f32.mrf.mxu0 }
 0x1b4   :  { %v942_v60 = vadd.f32 %v941_v6, %v928_v57 }
 0x1b6   :  { %v945_v62 = vmax.f32 %v942_v60, 0.0 }
 0x1b8   :  { %960 = vmatpush.xpose.msra.mxu1 %v945_v62 }
 0x1bc   :  { %961 = vmatpush.xpose.msra.mxu1 %v944_v63 }
 0x1bf   :  { %962 = vmatmul.f32.vlgmr.msra.gmra.mxu1 %v1853_v59 }
 0x23c   :  { %v963_v0 = vpop.f32.mrf.mxu1 }
 0x23d   :  { %v964_v35 = vadd.f32 %v963_v0, %v769_v17 }
 0x23f   :  { %966 = vst.msk [vmem:[#allocation10] sm:$0x1] %vm790_vm0, %v964_v35 }
 0x240   :  { %988 = dma.vmem_to_hbm [thread:$0]  %s984_s26, 16, %s986_s29, [#allocation11]  }
 0x241   :  { %1537 = dma.done.wait [#allocation5], 16  }
 0x242   :  { %1538 = vsyncadd [#allocation5], 4294967280 }
 0x243   :  { %1539 = dma.done.wait [#allocation11], 16  }
 0x244   :  { %1540 = vsyncadd [#allocation11], 4294967280 }
 0x245   :  { %997 = vsyncpa [#allocation4], 1 }
 0x246   :  { %998 = vsyncpa [#allocation7], 1 }
 0x247   :  { %999 = vsyncpa [#allocation5], 1 }
 0x248   :  { %1000 = vsyncpa [#allocation11], 1 }

</bundles_post_ra>
